<compile_context>
chip_gen: v7x
topology: tpu7x:2x2x1
jax: 0.10.0
libtpu: 0.0.40
codegen_flags: <defaults>
</compile_context>

<pallas_src>
import jax
import jax.numpy as jnp
from jax.experimental import pallas as pl
from jax.experimental.pallas import tpu as pltpu

IN_FEATURES = 4
HIDDEN = 128
OUT_FEATURES = 2
OUT_PAD = 128  # lane-dense output slab width


def qnet_kernel(x_ref, w1_ref, b1_ref, w2_ref, b2_ref, w3_ref, b3_ref, o_ref):
    x = x_ref[...]            # [TB, 4]   f32
    w1 = w1_ref[...]          # [4, 128]  f32

    # fc1 on the VPU: K=4 is far too shallow to be worth an MXU round-trip.
    h1 = x[:, 0:1] * w1[0:1, :]
    for k in range(1, IN_FEATURES):               # static unroll: 4 FMAs
        h1 = h1 + x[:, k:k + 1] * w1[k:k + 1, :]
    h1 = jnp.maximum(h1 + b1_ref[...], 0.0)       # [TB, 128] f32

    # fc2 + ReLU on the MXU (bf16 inputs, f32 accumulation).
    h2 = jnp.dot(h1.astype(jnp.bfloat16), w2_ref[...],
                 preferred_element_type=jnp.float32)
    h2 = jnp.maximum(h2 + b2_ref[...], 0.0)       # [TB, 128] f32

    # fc3 on the MXU into a lane-dense 128-wide slab (cols 2..127 are zeros).
    out = jnp.dot(h2.astype(jnp.bfloat16), w3_ref[...],
                  preferred_element_type=jnp.float32)
    o_ref[...] = (out + b3_ref[...]).astype(o_ref.dtype)


def qnet_forward(x, params, *, tb=512):
    """x: [B, 4] float32 -> [B, 2] float32 Q-values."""
    B = x.shape[0]

    # ---- parameter prep (wrapper-side; cheap XLA work) ----
    w1 = params["w1"].astype(jnp.float32)                       # [4, 128]
    b1 = params["b1"].reshape(1, HIDDEN).astype(jnp.float32)
    w2 = params["w2"].astype(jnp.bfloat16)                      # [128, 128]
    b2 = params["b2"].reshape(1, HIDDEN).astype(jnp.float32)
    # Pad fc3 to 128 output lanes so the last-layer store is unmasked.
    w3 = jnp.zeros((HIDDEN, OUT_PAD), jnp.float32)
    w3 = w3.at[:, :OUT_FEATURES].set(params["w3"]).astype(jnp.bfloat16)
    b3 = jnp.zeros((1, OUT_PAD), jnp.float32)
    b3 = b3.at[:, :OUT_FEATURES].set(params["b3"].reshape(1, OUT_FEATURES))

    # ---- batch tiling: clamp the tile to the (8-aligned) batch, pad B up ----
    tb_eff = min(tb, max(8, ((B + 7) // 8) * 8))
    n_blocks = pl.cdiv(B, tb_eff)
    b_pad = n_blocks * tb_eff
    if b_pad != B:
        x = jnp.zeros((b_pad, IN_FEATURES), x.dtype).at[:B].set(x)

    out = pl.pallas_call(
        qnet_kernel,
        out_shape=jax.ShapeDtypeStruct((b_pad, OUT_PAD), jnp.float32),
        grid_spec=pltpu.PrefetchScalarGridSpec(
            num_scalar_prefetch=0,
            grid=(n_blocks,),
            in_specs=[
                pl.BlockSpec((tb_eff, IN_FEATURES), lambda i: (i, 0)),  # x (tiled)
                pl.BlockSpec((IN_FEATURES, HIDDEN), lambda i: (0, 0)),  # w1 resident
                pl.BlockSpec((1, HIDDEN), lambda i: (0, 0)),            # b1
                pl.BlockSpec((HIDDEN, HIDDEN), lambda i: (0, 0)),       # w2
                pl.BlockSpec((1, HIDDEN), lambda i: (0, 0)),            # b2
                pl.BlockSpec((HIDDEN, OUT_PAD), lambda i: (0, 0)),      # w3 (padded)
                pl.BlockSpec((1, OUT_PAD), lambda i: (0, 0)),           # b3 (padded)
            ],
            out_specs=pl.BlockSpec((tb_eff, OUT_PAD), lambda i: (i, 0)),
        ),
        compiler_params=pltpu.CompilerParams(
            dimension_semantics=("parallel",),   # v7x: shard batch over 2 TCs
        ),
    )(x, w1, b1, w2, b2, w3, b3)

    # Drop the batch padding and the 126 zero-padded action columns.
    return out[:B, :OUT_FEATURES]


def init_params(key):
    """Deterministic init matching PyTorch Linear shapes (stored [in, out])."""
    k1, k2, k3, k4, k5, k6 = jax.random.split(key, 6)
    w1 = jax.random.normal(k1, (IN_FEATURES, HIDDEN), jnp.float32) * 0.1
    b1 = jax.random.normal(k2, (1, HIDDEN), jnp.float32) * 0.1
    w2 = jax.random.normal(k3, (HIDDEN, HIDDEN), jnp.float32) * 0.1
    b2 = jax.random.normal(k4, (1, HIDDEN), jnp.float32) * 0.1
    w3 = jax.random.normal(k5, (HIDDEN, OUT_FEATURES), jnp.float32) * 0.1
    b3 = jax.random.normal(k6, (1, OUT_FEATURES), jnp.float32) * 0.1
    return dict(w1=w1, b1=b1, w2=w2, b2=b2, w3=w3, b3=b3)


def qnet_ref(x, p):
    """Pure-JAX reference with the same bf16-input / f32-accumulate recipe."""
    h1 = jnp.maximum(x @ p["w1"] + p["b1"], 0.0)
    h2 = jnp.dot(h1.astype(jnp.bfloat16), p["w2"].astype(jnp.bfloat16),
                 preferred_element_type=jnp.float32) + p["b2"]
    h2 = jnp.maximum(h2, 0.0)
    out = jnp.dot(h2.astype(jnp.bfloat16), p["w3"].astype(jnp.bfloat16),
                  preferred_element_type=jnp.float32) + p["b3"]
    return out


if __name__ == "__main__":
    key = jax.random.PRNGKey(0)
    kx, kp = jax.random.split(key)

    # Non-multiple-of-tile batch to exercise both the grid (2 steps at TB=128)
    # and the batch-padding path.  For large replay/eval batches raise tb.
    B = 200
    x = jax.random.normal(kx, (B, IN_FEATURES), jnp.float32)
    params = init_params(kp)

    out = qnet_forward(x, params, tb=128)
    out = jax.block_until_ready(out)

    ref = qnet_ref(x, params)
    assert out.shape == (B, OUT_FEATURES), out.shape
    assert jnp.allclose(out, ref, atol=2e-2, rtol=2e-2), (
        float(jnp.max(jnp.abs(out - ref))))

    print("KERNEL_OK")
</pallas_src>

<mosaic_0001>
module attributes {stable_mosaic.version = 11 : i64} {
  func.func @qnet_kernel(%arg0: i32, %arg1: memref<128x4xf32, #tpu.memory_space<vmem>>, %arg2: memref<4x128xf32, #tpu.memory_space<vmem>>, %arg3: memref<1x128xf32, #tpu.memory_space<vmem>>, %arg4: memref<128x128xbf16, #tpu.memory_space<vmem>>, %arg5: memref<1x128xf32, #tpu.memory_space<vmem>>, %arg6: memref<128x128xbf16, #tpu.memory_space<vmem>>, %arg7: memref<1x128xf32, #tpu.memory_space<vmem>>, %arg8: memref<128x128xf32, #tpu.memory_space<vmem>>) attributes {dimension_semantics = [#tpu.dimension_semantics<parallel>], iteration_bounds = array<i64: 2>, scalar_prefetch = 0 : i64, scratch_operands = 0 : i64, tpu.core_type = #tpu.core_type<tc>, window_params = [{transform_indices = @transform_0, window_bounds = array<i64: 128, 4>}, {pipeline_mode = #tpu.pipeline_mode<synchronous>, transform_indices = @transform_1, window_bounds = array<i64: 4, 128>}, {pipeline_mode = #tpu.pipeline_mode<synchronous>, transform_indices = @transform_2, window_bounds = array<i64: 1, 128>}, {pipeline_mode = #tpu.pipeline_mode<synchronous>, transform_indices = @transform_3, window_bounds = array<i64: 128, 128>}, {pipeline_mode = #tpu.pipeline_mode<synchronous>, transform_indices = @transform_4, window_bounds = array<i64: 1, 128>}, {pipeline_mode = #tpu.pipeline_mode<synchronous>, transform_indices = @transform_5, window_bounds = array<i64: 128, 128>}, {pipeline_mode = #tpu.pipeline_mode<synchronous>, transform_indices = @transform_6, window_bounds = array<i64: 1, 128>}, {transform_indices = @transform_7, window_bounds = array<i64: 128, 128>}]} {
    %c0 = arith.constant 0 : index
    %c0_0 = arith.constant 0 : index
    %0 = vector.load %arg1[%c0, %c0_0] : memref<128x4xf32, #tpu.memory_space<vmem>>, vector<128x4xf32>
    %c0_1 = arith.constant 0 : index
    %c0_2 = arith.constant 0 : index
    %1 = vector.load %arg2[%c0_1, %c0_2] : memref<4x128xf32, #tpu.memory_space<vmem>>, vector<4x128xf32>
    %2 = vector.extract_strided_slice %0 {offsets = [0, 0], sizes = [128, 1], strides = [1, 1]} : vector<128x4xf32> to vector<128x1xf32>
    %3 = vector.extract_strided_slice %1 {offsets = [0, 0], sizes = [1, 128], strides = [1, 1]} : vector<4x128xf32> to vector<1x128xf32>
    %4 = vector.broadcast %2 : vector<128x1xf32> to vector<128x128xf32>
    %5 = vector.broadcast %3 : vector<1x128xf32> to vector<128x128xf32>
    %6 = arith.mulf %4, %5 : vector<128x128xf32>
    %7 = vector.extract_strided_slice %0 {offsets = [0, 1], sizes = [128, 1], strides = [1, 1]} : vector<128x4xf32> to vector<128x1xf32>
    %8 = vector.extract_strided_slice %1 {offsets = [1, 0], sizes = [1, 128], strides = [1, 1]} : vector<4x128xf32> to vector<1x128xf32>
    %9 = vector.broadcast %7 : vector<128x1xf32> to vector<128x128xf32>
    %10 = vector.broadcast %8 : vector<1x128xf32> to vector<128x128xf32>
    %11 = arith.mulf %9, %10 : vector<128x128xf32>
    %12 = arith.addf %6, %11 : vector<128x128xf32>
    %13 = vector.extract_strided_slice %0 {offsets = [0, 2], sizes = [128, 1], strides = [1, 1]} : vector<128x4xf32> to vector<128x1xf32>
    %14 = vector.extract_strided_slice %1 {offsets = [2, 0], sizes = [1, 128], strides = [1, 1]} : vector<4x128xf32> to vector<1x128xf32>
    %15 = vector.broadcast %13 : vector<128x1xf32> to vector<128x128xf32>
    %16 = vector.broadcast %14 : vector<1x128xf32> to vector<128x128xf32>
    %17 = arith.mulf %15, %16 : vector<128x128xf32>
    %18 = arith.addf %12, %17 : vector<128x128xf32>
    %19 = vector.extract_strided_slice %0 {offsets = [0, 3], sizes = [128, 1], strides = [1, 1]} : vector<128x4xf32> to vector<128x1xf32>
    %20 = vector.extract_strided_slice %1 {offsets = [3, 0], sizes = [1, 128], strides = [1, 1]} : vector<4x128xf32> to vector<1x128xf32>
    %21 = vector.broadcast %19 : vector<128x1xf32> to vector<128x128xf32>
    %22 = vector.broadcast %20 : vector<1x128xf32> to vector<128x128xf32>
    %23 = arith.mulf %21, %22 : vector<128x128xf32>
    %24 = arith.addf %18, %23 : vector<128x128xf32>
    %c0_3 = arith.constant 0 : index
    %c0_4 = arith.constant 0 : index
    %25 = vector.load %arg3[%c0_3, %c0_4] : memref<1x128xf32, #tpu.memory_space<vmem>>, vector<1x128xf32>
    %26 = vector.broadcast %25 : vector<1x128xf32> to vector<128x128xf32>
    %27 = arith.addf %24, %26 : vector<128x128xf32>
    %cst = arith.constant 0.000000e+00 : f32
    %28 = vector.broadcast %cst : f32 to vector<128x128xf32>
    %29 = arith.maximumf %27, %28 : vector<128x128xf32>
    %30 = arith.truncf %29 : vector<128x128xf32> to vector<128x128xbf16>
    %c0_5 = arith.constant 0 : index
    %c0_6 = arith.constant 0 : index
    %31 = vector.load %arg4[%c0_5, %c0_6] : memref<128x128xbf16, #tpu.memory_space<vmem>>, vector<128x128xbf16>
    %cst_7 = arith.constant dense<0.000000e+00> : vector<128x128xf32>
    %32 = tpu.matmul %30, %31, %cst_7 {dimension_numbers = #tpu.dot_dimension_numbers<[1], [0], [0], [1], [0, 0, 1, 1], [], []>} : vector<128x128xbf16>, vector<128x128xbf16>, vector<128x128xf32> -> vector<128x128xf32>
    %c0_8 = arith.constant 0 : index
    %c0_9 = arith.constant 0 : index
    %33 = vector.load %arg5[%c0_8, %c0_9] : memref<1x128xf32, #tpu.memory_space<vmem>>, vector<1x128xf32>
    %34 = vector.broadcast %33 : vector<1x128xf32> to vector<128x128xf32>
    %35 = arith.addf %32, %34 : vector<128x128xf32>
    %cst_10 = arith.constant 0.000000e+00 : f32
    %36 = vector.broadcast %cst_10 : f32 to vector<128x128xf32>
    %37 = arith.maximumf %35, %36 : vector<128x128xf32>
    %38 = arith.truncf %37 : vector<128x128xf32> to vector<128x128xbf16>
    %c0_11 = arith.constant 0 : index
    %c0_12 = arith.constant 0 : index
    %39 = vector.load %arg6[%c0_11, %c0_12] : memref<128x128xbf16, #tpu.memory_space<vmem>>, vector<128x128xbf16>
    %cst_13 = arith.constant dense<0.000000e+00> : vector<128x128xf32>
    %40 = tpu.matmul %38, %39, %cst_13 {dimension_numbers = #tpu.dot_dimension_numbers<[1], [0], [0], [1], [0, 0, 1, 1], [], []>} : vector<128x128xbf16>, vector<128x128xbf16>, vector<128x128xf32> -> vector<128x128xf32>
    %c0_14 = arith.constant 0 : index
    %c0_15 = arith.constant 0 : index
    %41 = vector.load %arg7[%c0_14, %c0_15] : memref<1x128xf32, #tpu.memory_space<vmem>>, vector<1x128xf32>
    %42 = vector.broadcast %41 : vector<1x128xf32> to vector<128x128xf32>
    %43 = arith.addf %40, %42 : vector<128x128xf32>
    %c0_16 = arith.constant 0 : index
    %c0_17 = arith.constant 0 : index
    %44 = vector.load %arg8[%c0_16, %c0_17] : memref<128x128xf32, #tpu.memory_space<vmem>>, vector<128x128xf32>
    tpu.vector_store %arg8[%c0_16, %c0_17], %43 {strides = array<i32>} : memref<128x128xf32, #tpu.memory_space<vmem>>, vector<128x128xf32>,
    return
  }
  func.func @transform_0(%arg0: i32) -> (i32, i32) {
    %c0_i32 = arith.constant 0 : i32
    %c0_i32_0 = arith.constant 0 : i32
    return %arg0, %c0_i32 : i32, i32
  }
  func.func @transform_1(%arg0: i32) -> (i32, i32) {
    %c0_i32 = arith.constant 0 : i32
    %c0_i32_0 = arith.constant 0 : i32
    %c0_i32_1 = arith.constant 0 : i32
    return %c0_i32, %c0_i32_0 : i32, i32
  }
  func.func @transform_2(%arg0: i32) -> (i32, i32) {
    %c0_i32 = arith.constant 0 : i32
    %c0_i32_0 = arith.constant 0 : i32
    %c0_i32_1 = arith.constant 0 : i32
    return %c0_i32, %c0_i32_0 : i32, i32
  }
  func.func @transform_3(%arg0: i32) -> (i32, i32) {
    %c0_i32 = arith.constant 0 : i32
    %c0_i32_0 = arith.constant 0 : i32
    %c0_i32_1 = arith.constant 0 : i32
    return %c0_i32, %c0_i32_0 : i32, i32
  }
  func.func @transform_4(%arg0: i32) -> (i32, i32) {
    %c0_i32 = arith.constant 0 : i32
    %c0_i32_0 = arith.constant 0 : i32
    %c0_i32_1 = arith.constant 0 : i32
    return %c0_i32, %c0_i32_0 : i32, i32
  }
  func.func @transform_5(%arg0: i32) -> (i32, i32) {
    %c0_i32 = arith.constant 0 : i32
    %c0_i32_0 = arith.constant 0 : i32
    %c0_i32_1 = arith.constant 0 : i32
    return %c0_i32, %c0_i32_0 : i32, i32
  }
  func.func @transform_6(%arg0: i32) -> (i32, i32) {
    %c0_i32 = arith.constant 0 : i32
    %c0_i32_0 = arith.constant 0 : i32
    %c0_i32_1 = arith.constant 0 : i32
    return %c0_i32, %c0_i32_0 : i32, i32
  }
  func.func @transform_7(%arg0: i32) -> (i32, i32) {
    %c0_i32 = arith.constant 0 : i32
    %c0_i32_0 = arith.constant 0 : i32
    return %arg0, %c0_i32 : i32, i32
  }
}

</mosaic_0001>

<bundles_post_ra>
// kernel: tpu_custom_call.1
= control target key start
LH: loop header
LB: loop body
LE: loop exit
PB: predicated region body
PF: predicated region fallthrough
CT: control target
= control target key end

     0   :  { %12 = vsyncpa [#allocation3], 0  ;;  %s1952_s0 = inlined_call_operand.vmem [shape: f32[256,4], index: 0, kind: input, shape index: {}]   ;;  %s1953_s1 = inlined_call_operand.vmem [shape: f32[4,128], index: 1, kind: input, shape index: {}]   ;;  %s1954_s2 = inlined_call_operand.vmem [shape: f32[1,128], index: 2, kind: input, shape index: {}]   ;;  %s1955_s3 = inlined_call_operand.vmem [shape: bf16[128,128], index: 3, kind: input, shape index: {}]   ;;  %s1956_s4 = inlined_call_operand.vmem [shape: f32[1,128], index: 4, kind: input, shape index: {}]   ;;  %s1957_s5 = inlined_call_operand.vmem [shape: bf16[128,128], index: 5, kind: input, shape index: {}]   ;;  %s1958_s6 = inlined_call_operand.vmem [shape: f32[1,128], index: 6, kind: input, shape index: {}]   ;;  %s1959_s7 = inlined_call_operand.hbm [shape: f32[256,128], index: 7, kind: output, shape index: {}]  }
   0x1   :  { %14 = vsyncpa [#allocation3 + $0x1], 0  ;;  %s1524_s24 = smov 0   ;;  %s1526_s25 = smov 0  }
   0x2   :  { %s1528_s26 = smov 0   ;;  %s1530_s27 = smov 0  }
   0x3 LB: > { %s1545_s28 = sadd.s32 4294967295, %s1475_s27   ;;  %s1197_s29 = sadd.s32 4294967294, %s1475_s27   ;;  %s1475_s27 = sphi %s1530_s27, %s1965_s27   ;;  %s1471_s26 = sphi %s1528_s26, %s1964_s26   ;;  %s1467_s25 = sphi %s1526_s25, %s1963_s25   ;;  %s1463_s24 = sphi %s1524_s24, %s1962_s24  }
   0x4   : > { %s1549_s30 = sadd.s32 1, %s1475_s27   ;;  %s179_s8 = sadd.s32 1, %s1471_s26 }
   0x5   : > { %s176_s9 = ssub.s32 %s1475_s27, %s1549_s30  ;;  %p189_p0 = scmp.ne.s32.totalorder %s1471_s26, %s1467_s25 }
   0x6   : > { %p177_p1 = scmp.eq.s32.totalorder %s176_s9, 0  ;;  %p190_p2 = scmp.eq.s32.totalorder %s1545_s28, 1 }
   0x7   : > { %p195_p3 = scmp.ne.s32.totalorder %s1467_s25, %s1463_s24  ;;  %p196_p4 = scmp.eq.s32.totalorder %s1197_s29, 1 }
   0x8   : > { %s1560_s10 = scalar_select %p177_p1, %s1471_s26, %s179_s8  }
   0x9   : > { %p1562_p5 = por %p190_p2, %p189_p0  ;;  %p1566_p6 = por %p196_p4, %p195_p3 }
   0xa   : > { %p1200_p7 = scmp.ge.s32.totalorder %s1475_s27, 1  ;;  %p241_p8 = scmp.lt.s32.totalorder %s1475_s27, 3 }
   0xc   : > { %p242_p9 = pnand %p1200_p7, %p241_p8 }
   0xd   : > { %s1202_s13 = sshll.u32 (!%p242_p9), %s1545_s28, 4  ;;  %v1477_v0 = vmov (!%p242_p9), 1   ;;  %v1478_v1 = vmov (!%p242_p9), 0   ;;  %v1479_v9 = vmov (!%p242_p9), 2   ;;  %v1480_v13 = vmov (!%p242_p9), 3   ;;  %v1397_v15 = vld [vmem:[%s1955_s3] sm:$0xff] (!%p242_p9)  }
   0xe   : > { %245 = sbr.rel (%p242_p9) target bundleno = 791 (0x317), region = 48  ;;  %1371 = vset.pattern.permute.xlu1 (!%p242_p9), %v1477_v0  ;;  %1370 = vset.pattern.permute.xlu0 (!%p242_p9), %v1478_v1  ;;  %p274_p10 = scmp.lt.s32.totalorder (!%p242_p9), %s1202_s13, 31  ;;  %v1398_v17 = vld [vmem:[%s1955_s3 + $0x8] sm:$0xff] (!%p242_p9)   ;;  %v1399_v18 = vld [vmem:[%s1955_s3 + $0x10] sm:$0xff] (!%p242_p9)   ;;  %v1400_v19 = vld [vmem:[%s1955_s3 + $0x18] sm:$0xff] (!%p242_p9)   ;;  %v378_v43 = vlaneseq (!%p242_p9) }
   0xf   : > { %1261 = vmatprep.subr.bf16.mxu0 (!%p242_p9), %v1397_v15  ;;  %v1401_v20 = vld [vmem:[%s1955_s3 + $0x20] sm:$0xff] (!%p242_p9)   ;;  %v1402_v21 = vld [vmem:[%s1955_s3 + $0x28] sm:$0xff] (!%p242_p9)   ;;  %v1403_v22 = vld [vmem:[%s1955_s3 + $0x30] sm:$0xff] (!%p242_p9)   ;;  %s1228_s20 = sshll.u32 (!%p242_p9), %s1545_s28, 11  ;;  %s1481_s8 = smov (!%p242_p9), [#allocation2]  }
  0x10   : > { %1262 = vmatpush3.bf16.msra.mxu0 (!%p242_p9), %v1397_v15  ;;  %v1404_v23 = vld [vmem:[%s1955_s3 + $0x38] sm:$0xff] (!%p242_p9)   ;;  %v379_v46 = vshrl.u32 (!%p242_p9), %v378_v43, 7  ;;  %v297_v50 = vld [vmem:[%s1953_s1] sm:$0xf] (!%p242_p9)  ;;  %v1407_v15 = vld [vmem:[%s1957_s5 + $0x10] sm:$0xff] (!%p242_p9)   ;;  %s1902_s23 = scalar_lea.hbm (!%p242_p9), %s1959_s7, %s1228_s20  ;;  %s1417_s9 = sshll.u32 (!%p242_p9), %s1481_s8, 4  ;;  %s1418_s9 = int_to_ptr.vmem [resolvable:$false] %s1417_s9 }
  0x11   : > { %1263 = vmatprep.subr.bf16.mxu0 (!%p242_p9), %v1398_v17 }
  0x12   : > { %v380_v49 = vsub.s32 (!%p242_p9), 0, %v379_v46  ;;  %v464_v51 = vsub.s32 (!%p242_p9), 1, %v379_v46 }
  0x14   : > { %1264 = vmatpush3.bf16.msra.mxu0 (!%p242_p9), %v1398_v17  ;;  %v1721_v54 = vrot.slane (!%p242_p9), %v297_v50, %v380_v49  ;;  %v1725_v55 = vrot.slane (!%p242_p9), %v297_v50, %v464_v51 }
  0x15   : > { %s1967_s13 = smov (!%p274_p10, %s1202_s13), 31  ;;  %1265 = vmatprep.subr.bf16.mxu0 %v1399_v18 }
  0x16   : > { %s1203_s14 = sshll.u32 %s1967_s13, 3  ;;  %s1419_s13 = scalar_lea.vmem %s1418_s9, 4096 }
  0x17   : > { %s1578_s17 = scalar_lea.vmem %s1952_s0, %s1203_s14  ;;  %s270_s14 = sand.u32 1, %s1467_s25  }
  0x18   : > { %v1581_v2 = vld [vmem:[%s1578_s17] sm:$0xff]  ;;  %v282_v3 = vld [vmem:[%s1578_s17 + $0x8] sm:$0xff]  ;;  %v283_v4 = vld [vmem:[%s1578_s17 + $0x10] sm:$0xff]  ;;  %1266 = vmatpush3.bf16.msra.mxu0 %v1399_v18  ;;  %s1201_s15 = sshll.u32 %s270_s14, 7  ;;  %s1911_s28 = scalar_lea.sflag [#allocation3], %s270_s14 }
  0x19   : > { %399 = vperm.xlu1 %1371, %v1581_v2   ;;  %300 = vperm.xlu0 %1370, %v1581_v2   ;;  %v1588_v5 = vld [vmem:[%s1578_s17 + $0x18] sm:$0xff]  ;;  %v1591_v6 = vld [vmem:[%s1578_s17 + $0x28] sm:$0xff]  ;;  %v1598_v7 = vld [vmem:[%s1578_s17 + $0x30] sm:$0xff]  ;;  %s1882_s19 = scalar_lea.vmem [#allocation2], %s1201_s15 }
  0x1a   : > { %v1603_v8 = vld [vmem:[%s1578_s17 + $0x48] sm:$0xff]  ;;  %v1609_v10 = vld [vmem:[%s1578_s17 + $0x50] sm:$0xff]  ;;  %v285_v14 = vld [vmem:[%s1578_s17 + $0x20] sm:$0xff]  ;;  %1267 = vmatprep.subr.bf16.mxu0 %v1400_v19 }
  0x1b   : > { %v1613_v11 = vld [vmem:[%s1578_s17 + $0x68] sm:$0xff]  ;;  %v1618_v12 = vld [vmem:[%s1578_s17 + $0x70] sm:$0xff]  ;;  %v288_v16 = vld [vmem:[%s1578_s17 + $0x38] sm:$0xff] }
  0x1c   : > { %1268 = vmatpush3.bf16.msra.mxu0 %v1400_v19  ;;  %v289_v24 = vld [vmem:[%s1578_s17 + $0x40] sm:$0xff]  ;;  %v292_v25 = vld [vmem:[%s1578_s17 + $0x58] sm:$0xff] }
  0x1d   : > { %403 = vperm.xlu1 %1371, %v282_v3   ;;  %305 = vperm.xlu0 %1370, %v282_v3   ;;  %v293_v26 = vld [vmem:[%s1578_s17 + $0x60] sm:$0xff]  ;;  %v296_v27 = vld [vmem:[%s1578_s17 + $0x78] sm:$0xff]  ;;  %s1135_s17 = sshll.u32 %s1882_s19, 4  ;;  %s1904_s17 = int_to_ptr.vmem [resolvable:$true] %s1135_s17 }
  0x1e   : > { %1269 = vmatprep.subr.bf16.mxu0 %v1401_v20  ;;  %s1413_s29 = scalar_lea.vmem %s1904_s17, 2048  ;;  %p1420_p0 = scmp.lt.s32.totalorder %s1904_s17, %s1418_s9 }
  0x1f   : > { %p1414_p11 = scmp.ne.s32.totalorder %s1904_s17, %s1413_s29  ;;  %p1421_p1 = scmp.lt.s32.totalorder %s1419_s13, %s1413_s29 }
  0x20   : > { %1270 = vmatpush3.bf16.msra.mxu0 %v1401_v20 }
  0x21   : > { %1372 = vset.pattern.permute.xlu1 %v1478_v1  ;;  %310 = vperm.xlu0 %1370, %v283_v4   ;;  %p1415_p12 = pnand %p1414_p11, %p1562_p5  ;;  %p1422_p2 = por %p1421_p1, %p1420_p0 }
  0x22   : > { %315 = vperm.xlu1 %1372, %v1588_v5   ;;  %1271 = vmatprep.subr.bf16.mxu0 %v1402_v21 }
  0x23   : > { %p1416_p13 = pneg %p1415_p12 }
  0x24   : > { %1272 = vmatpush3.bf16.msra.mxu0 %v1402_v21 }
  0x25   : > { %325 = vperm.xlu0 %1370, %v1591_v6   ;;  %1273 = vmatprep.subr.bf16.mxu0 %v1403_v22  ;;  %p1423_p3 = pnand %p1422_p2, %p1416_p13 }
  0x26   : > { %1373 = vset.pattern.permute.xlu1 %v1477_v0 }
  0x27   : > { %411 = vperm.xlu1 %1373, %v1588_v5  }
  0x28   : > { %1274 = vmatpush3.bf16.msra.mxu0 %v1403_v22  ;;  %v1408_v22 = vld [vmem:[%s1957_s5 + $0x18] sm:$0xff]  }
  0x29   : > { %330 = vperm.xlu0 %1370, %v1598_v7   ;;  %1275 = vmatprep.subr.bf16.mxu0 %v1404_v23 }
  0x2b   : > { %1374 = vset.pattern.permute.xlu1 %v1479_v9 }
  0x2c   : > { %499 = vperm.xlu1 %1374, %v1581_v2   ;;  %1276 = vmatpush3.bf16.msra.mxu0 %v1404_v23 }
  0x2d   : > { %345 = vperm.xlu0 %1370, %v1603_v8  }
  0x30   : > { %507 = vperm.xlu1 %1374, %v283_v4  }
  0x31   : > { %350 = vperm.xlu0 %1370, %v1609_v10  }
  0x34   : > { %511 = vperm.xlu1 %1374, %v1588_v5  }
  0x35   : > { %365 = vperm.xlu0 %1370, %v1613_v11  }
  0x38   : > { %1375 = vset.pattern.permute.xlu1 %v1480_v13 }
  0x39   : > { %603 = vperm.xlu1 %1375, %v282_v3   ;;  %370 = vperm.xlu0 %1370, %v1618_v12  }
  0x3d   : > { %607 = vperm.xlu1 %1375, %v283_v4   ;;  %1390 = vset.pattern.permute.xlu0 %v1477_v0 }
  0x3e   : > { %407 = vperm.xlu0 %1390, %v283_v4   ;;  %v564_v4 = vsub.s32 2, %v379_v46 }
  0x41   : > { %1376 = vset.pattern.permute.xlu1 %v1478_v1 }
  0x42   : > { %320 = vperm.xlu1 %1376, %v285_v14   ;;  %423 = vperm.xlu0 %1390, %v1598_v7  }
  0x46   : > { %1377 = vset.pattern.permute.xlu1 %v1477_v0  ;;  %439 = vperm.xlu0 %1390, %v1609_v10  }
  0x47   : > { %415 = vperm.xlu1 %1377, %v285_v14  }
  0x4a   : > { %455 = vperm.xlu0 %1390, %v1618_v12  }
  0x4b   : > { %419 = vperm.xlu1 %1377, %v1591_v6  }
  0x4e   : > { %1392 = vset.pattern.permute.xlu0 %v1479_v9 }
  0x4f   : > { %1378 = vset.pattern.permute.xlu1 %v1478_v1  ;;  %503 = vperm.xlu0 %1392, %v282_v3  }
  0x50   : > { %335 = vperm.xlu1 %1378, %v288_v16  }
  0x53   : > { %519 = vperm.xlu0 %1392, %v1591_v6  }
  0x54   : > { %1379 = vset.pattern.permute.xlu1 %v1477_v0 }
  0x55   : > { %427 = vperm.xlu1 %1379, %v288_v16  }
  0x57   : > { %535 = vperm.xlu0 %1392, %v1603_v8  }
  0x59   : > { %1380 = vset.pattern.permute.xlu1 %v1479_v9 }
  0x5a   : > { %515 = vperm.xlu1 %1380, %v285_v14  }
  0x5b   : > { %551 = vperm.xlu0 %1392, %v1613_v11  }
  0x5e   : > { %523 = vperm.xlu1 %1380, %v1598_v7  }
  0x5f   : > { %1395 = vset.pattern.permute.xlu0 %v1480_v13 }
  0x60   : > { %599 = vperm.xlu0 %1395, %v1581_v2  }
  0x62   : > { %527 = vperm.xlu1 %1380, %v288_v16  }
  0x64   : > { %611 = vperm.xlu0 %1395, %v1588_v5   ;;  %v1405_v5 = vld [vmem:[%s1957_s5] sm:$0xff]  }
  0x65   : > { %1293 = vmatprep.subr.bf16.mxu1 %v1405_v5 }
  0x66   : > { %1381 = vset.pattern.permute.xlu1 %v1480_v13  ;;  %1294 = vmatpush3.bf16.msra.mxu1 %v1405_v5 }
  0x67   : > { %619 = vperm.xlu1 %1381, %v1591_v6   ;;  %v1406_v6 = vld [vmem:[%s1957_s5 + $0x8] sm:$0xff]  }
  0x68   : > { %615 = vperm.xlu0 %1395, %v285_v14   ;;  %1295 = vmatprep.subr.bf16.mxu1 %v1406_v6 }
  0x6a   : > { %1296 = vmatpush3.bf16.msra.mxu1 %v1406_v6 }
  0x6b   : > { %623 = vperm.xlu1 %1381, %v1598_v7   ;;  %1297 = vmatprep.subr.bf16.mxu1 %v1407_v15 }
  0x6c   : > { %627 = vperm.xlu0 %1395, %v288_v16  }
  0x6e   : > { %1298 = vmatpush3.bf16.msra.mxu1 %v1407_v15 }
  0x6f   : > { %1382 = vset.pattern.permute.xlu1 %v1478_v1  ;;  %1299 = vmatprep.subr.bf16.mxu1 %v1408_v22 }
  0x70   : > { %340 = vperm.xlu1 %1382, %v289_v24   ;;  %631 = vperm.xlu0 %1395, %v289_v24  }
  0x72   : > { %1300 = vmatpush3.bf16.msra.mxu1 %v1408_v22 }
  0x74   : > { %1383 = vset.pattern.permute.xlu1 %v1477_v0  ;;  %643 = vperm.xlu0 %1395, %v292_v25  }
  0x75   : > { %431 = vperm.xlu1 %1383, %v289_v24  }
  0x78   : > { %647 = vperm.xlu0 %1395, %v293_v26  }
  0x79   : > { %435 = vperm.xlu1 %1383, %v1603_v8  }
  0x7c   : > { %659 = vperm.xlu0 %1395, %v296_v27  }
  0x7d   : > { %1384 = vset.pattern.permute.xlu1 %v1478_v1 }
  0x7e   : > { %355 = vperm.xlu1 %1384, %v292_v25  }
  0x82   : > { %1385 = vset.pattern.permute.xlu1 %v1477_v0 }
  0x83   : > { %443 = vperm.xlu1 %1385, %v292_v25  }
  0x87   : > { %1386 = vset.pattern.permute.xlu1 %v1479_v9 }
  0x88   : > { %531 = vperm.xlu1 %1386, %v289_v24  }
  0x8c   : > { %539 = vperm.xlu1 %1386, %v1609_v10  }
  0x90   : > { %543 = vperm.xlu1 %1386, %v292_v25  }
  0x94   : > { %1387 = vset.pattern.permute.xlu1 %v1480_v13 }
  0x95   : > { %635 = vperm.xlu1 %1387, %v1603_v8  }
  0x98   : > { %v1682_v28 = vpop.permute.xlu1 %399  ;;  %v1684_v29 = vpop.permute.xlu0 %300 }
  0x99   : > { %639 = vperm.xlu1 %1387, %v1609_v10   ;;  %v1746_v10 = vrot.slane %v297_v50, %v564_v4  ;;  %v466_v23 = vmul.f32 %v1725_v55, %v1682_v28  ;;  %v382_v24 = vmul.f32 %v1721_v54, %v1684_v29  ;;  %v1409_v28 = vld [vmem:[%s1957_s5 + $0x20] sm:$0xff]  }
  0x9a   : > { %1301 = vmatprep.subr.bf16.mxu1 %v1409_v28 }
  0x9b   : > { %v482_v29 = vadd.f32 %v466_v23, %v382_v24  ;;  %1302 = vmatpush3.bf16.msra.mxu1 %v1409_v28 }
  0x9c   : > { %v404_v30 = vpop.permute.xlu1 %403  ;;  %v306_v31 = vpop.permute.xlu0 %305 }
  0x9d   : > { %1388 = vset.pattern.permute.xlu1 %v1478_v1  ;;  %v467_v8 = vmul.f32 %v1725_v55, %v404_v30 }
  0x9e   : > { %360 = vperm.xlu1 %1388, %v293_v26  }
  0xa0   : > { %v311_v32 = vpop.permute.xlu0 %310 }
  0xa1   : > { %v1688_v33 = vpop.permute.xlu1 %315 }
  0xa2   : > { %1389 = vset.pattern.permute.xlu1 %v1477_v0 }
  0xa3   : > { %447 = vperm.xlu1 %1389, %v293_v26  }
  0xa4   : > { %v1691_v34 = vpop.permute.xlu0 %325 }
  0xa6   : > { %v1693_v35 = vpop.permute.xlu1 %411 }
  0xa7   : > { %451 = vperm.xlu1 %1389, %v1613_v11   ;;  %v469_v43 = vmul.f32 %v1725_v55, %v1693_v35 }
  0xa8   : > { %v1696_v36 = vpop.permute.xlu0 %330 }
  0xab   : > { %1391 = vset.pattern.permute.xlu1 %v1478_v1  ;;  %v1699_v37 = vpop.permute.xlu1 %499 }
  0xac   : > { %375 = vperm.xlu1 %1391, %v296_v27   ;;  %v1701_v38 = vpop.permute.xlu0 %345  ;;  %v566_v30 = vmul.f32 %v1746_v10, %v1699_v37  ;;  %v388_v37 = vmul.f32 %v1721_v54, %v1696_v36 }
  0xaf   : > { %v1703_v39 = vpop.permute.xlu1 %507 }
  0xb0   : > { %1393 = vset.pattern.permute.xlu1 %v1477_v0  ;;  %v351_v40 = vpop.permute.xlu0 %350 }
  0xb1   : > { %459 = vperm.xlu1 %1393, %v296_v27   ;;  %v392_v56 = vmul.f32 %v1721_v54, %v351_v40 }
  0xb3   : > { %v1706_v41 = vpop.permute.xlu1 %511 }
  0xb4   : > { %v1708_v42 = vpop.permute.xlu0 %365  ;;  %v569_v49 = vmul.f32 %v1746_v10, %v1706_v41  ;;  %v1410_v41 = vld [vmem:[%s1957_s5 + $0x28] sm:$0xff]  }
  0xb5   : > { %1394 = vset.pattern.permute.xlu1 %v1479_v9  ;;  %v383_v9 = vmul.f32 %v1721_v54, %v306_v31  ;;  %1303 = vmatprep.subr.bf16.mxu1 %v1410_v41 }
  0xb6   : > { %547 = vperm.xlu1 %1394, %v293_v26   ;;  %1304 = vmatpush3.bf16.msra.mxu1 %v1410_v41 }
  0xb7   : > { %v483_v18 = vadd.f32 %v467_v8, %v383_v9 }
  0xb8   : > { %v604_v44 = vpop.permute.xlu1 %603  ;;  %v371_v45 = vpop.permute.xlu0 %370 }
  0xb9   : > { %v396_v60 = vmul.f32 %v1721_v54, %v371_v45 }
  0xba   : > { %555 = vperm.xlu1 %1394, %v1618_v12  }
  0xbc   : > { %v1712_v47 = vpop.permute.xlu1 %607 }
  0xbd   : > { %v408_v48 = vpop.permute.xlu0 %407 }
  0xbe   : > { %559 = vperm.xlu1 %1394, %v296_v27   ;;  %v468_v14 = vmul.f32 %v1725_v55, %v408_v48  ;;  %v568_v27 = vmul.f32 %v1746_v10, %v1703_v39  ;;  %v385_v39 = vmul.f32 %v1721_v54, %v1688_v33  ;;  %v582_v48 = vadd.f32 %v566_v30, %v482_v29 }
  0xbf   : > { %v387_v33 = vmul.f32 %v1721_v54, %v1691_v34 }
  0xc1   : > { %v1717_v52 = vpop.permute.xlu1 %320  ;;  %v1719_v53 = vpop.permute.xlu0 %423 }
  0xc2   : > { %1396 = vset.pattern.permute.xlu1 %v1480_v13  ;;  %v384_v13 = vmul.f32 %v1721_v54, %v311_v32 }
  0xc3   : > { %651 = vperm.xlu1 %1396, %v1613_v11   ;;  %v664_v11 = vsub.s32 3, %v379_v46 }
  0xc4   : > { %v484_v20 = vadd.f32 %v468_v14, %v384_v13 }
  0xc5   : > { %v440_v57 = vpop.permute.xlu0 %439  ;;  %v1758_v19 = vrot.slane %v297_v50, %v664_v11  ;;  %v472_v50 = vmul.f32 %v1725_v55, %v1719_v53  ;;  %v485_v53 = vadd.f32 %v469_v43, %v385_v39 }
  0xc6   : > { %v416_v58 = vpop.permute.xlu1 %415  ;;  %v476_v59 = vmul.f32 %v1725_v55, %v440_v57  ;;  %v584_v32 = vadd.f32 %v568_v27, %v484_v20  ;;  %v1797_v57 = vld [vmem:[%s1954_s2] ss:$0 sm:$0xff] }
  0xc7   : > { %655 = vperm.xlu1 %1396, %v1618_v12   ;;  %v667_v31 = vmul.f32 %v1758_v19, %v604_v44  ;;  %v668_v44 = vmul.f32 %v1758_v19, %v1712_v47  ;;  %v470_v36 = vmul.f32 %v1725_v55, %v416_v58  ;;  %v386_v58 = vmul.f32 %v1721_v54, %v1717_v52 }
  0xc8   : > { %v1731_v61 = vadd.f32 %v476_v59, %v392_v56 }
  0xc9   : > { %v456_v62 = vpop.permute.xlu0 %455  ;;  %v684_v51 = vadd.f32 %v668_v44, %v584_v32  ;;  %v486_v6 = vadd.f32 %v470_v36, %v386_v58 }
  0xca   : > { %v420_v63 = vpop.permute.xlu1 %419  ;;  %v480_v0 = vmul.f32 %v1725_v55, %v456_v62 }
  0xcb   : > { %v471_v56 = vmul.f32 %v1725_v55, %v420_v63  ;;  %v707_v11 = vadd.f32 %v1797_v57, %v684_v51 }
  0xcc   : > { %v1734_v1 = vadd.f32 %v480_v0, %v396_v60  ;;  %v585_v0 = vadd.f32 %v569_v49, %v485_v53 }
  0xcd   : > { %v487_v8 = vadd.f32 %v471_v56, %v387_v33  ;;  %v723_v28 = vmax.f32 %v707_v11, 0.0  ;;  %v391_v11 = vmul.f32 %v1721_v54, %v1701_v38 }
  0xce   : > { %v504_v2 = vpop.permute.xlu0 %503 }
  0xcf   : > { %v1736_v3 = vpop.permute.xlu1 %335  ;;  %v567_v16 = vmul.f32 %v1746_v10, %v504_v2  ;;  %v488_v2 = vadd.f32 %v472_v50, %v388_v37 }
  0xd0   : > { %v389_v9 = vmul.f32 %v1721_v54, %v1736_v3 }
  0xd1   : > { %v583_v25 = vadd.f32 %v567_v16, %v483_v18 }
  0xd2   : > { %v520_v7 = vpop.permute.xlu0 %519 }
  0xd3   : > { %v683_v45 = vadd.f32 %v667_v31, %v583_v25  ;;  %v571_v60 = vmul.f32 %v1746_v10, %v520_v7 }
  0xd4   : > { %v1748_v12 = vpop.permute.xlu1 %427 }
  0xd5   : > { %v706_v34 = vadd.f32 %v1797_v57, %v683_v45  ;;  %v473_v52 = vmul.f32 %v1725_v55, %v1748_v12  ;;  %v587_v16 = vadd.f32 %v571_v60, %v487_v8 }
  0xd6   : > { %v1756_v17 = vpop.permute.xlu0 %535 }
  0xd7   : > { %v722_v15 = vmax.f32 %v706_v34, 0.0  ;;  %v489_v27 = vadd.f32 %v473_v52, %v389_v9 }
  0xd9   : > { %v516_v21 = vpop.permute.xlu1 %515 }
  0xda   : > { %v1767_v26 = vpop.permute.xlu0 %551  ;;  %v570_v62 = vmul.f32 %v1746_v10, %v516_v21 }
  0xdc   : > { %v586_v18 = vadd.f32 %v570_v62, %v486_v6 }
  0xdd   : > { %v524_v40 = vpop.permute.xlu1 %523 }
  0xde   : > { %v572_v20 = vmul.f32 %v1746_v10, %v524_v40 }
  0xdf   : > { %v600_v46 = vpop.permute.xlu0 %599 }
  0xe0   : > { %v666_v35 = vmul.f32 %v1758_v19, %v600_v46  ;;  %v588_v29 = vadd.f32 %v572_v20, %v488_v2 }
  0xe1   : > { %v528_v47 = vpop.permute.xlu1 %527 }
  0xe2   : > { %v682_v59 = vadd.f32 %v666_v35, %v582_v48  ;;  %v573_v23 = vmul.f32 %v1746_v10, %v528_v47 }
  0xe3   : > { %v612_v63 = vpop.permute.xlu0 %611 }
  0xe4   : > { %v669_v4 = vmul.f32 %v1758_v19, %v612_v63  ;;  %v705_v5 = vadd.f32 %v1797_v57, %v682_v59  ;;  %v589_v39 = vadd.f32 %v573_v23, %v489_v27 }
  0xe6   : > { %v685_v7 = vadd.f32 %v669_v4, %v585_v0  ;;  %v620_v13 = vpop.permute.xlu1 %619  ;;  %v721_v14 = vmax.f32 %v705_v5, 0.0 }
  0xe7   : > { %v671_v21 = vmul.f32 %v1758_v19, %v620_v13  ;;  %v616_v22 = vpop.permute.xlu0 %615 }
  0xe8   : > { %v708_v3 = vadd.f32 %v1797_v57, %v685_v7  ;;  %v670_v24 = vmul.f32 %v1758_v19, %v616_v22  ;;  %v737_v25 = vpack.c.bf16 %v722_v15, %v721_v14 }
  0xe9   : > { %v687_v12 = vadd.f32 %v671_v21, %v587_v16 }
  0xea   : > { %v724_v30 = vmax.f32 %v708_v3, 0.0  ;;  %v686_v31 = vadd.f32 %v670_v24, %v586_v18  ;;  %v624_v32 = vpop.permute.xlu1 %623  ;;  %1277 = vmatprep.mubr.bf16.mxu0 %v737_v25  ;;  %v575_v18 = vmul.f32 %v1746_v10, %v1756_v17 }
  0xeb   : > { %v710_v40 = vadd.f32 %v1797_v57, %v687_v12  ;;  %v672_v43 = vmul.f32 %v1758_v19, %v624_v32  ;;  %v628_v45 = vpop.permute.xlu0 %627 }
  0xec   : > { %v709_v37 = vadd.f32 %v1797_v57, %v686_v31  ;;  %v673_v44 = vmul.f32 %v1758_v19, %v628_v45  ;;  %v738_v46 = vpack.c.bf16 %v724_v30, %v723_v28 }
  0xed   : > { %v726_v48 = vmax.f32 %v710_v40, 0.0  ;;  %v688_v49 = vadd.f32 %v672_v43, %v588_v29 }
  0xee   : > { %v725_v50 = vmax.f32 %v709_v37, 0.0  ;;  %v689_v35 = vadd.f32 %v673_v44, %v589_v39  ;;  %1278 = vmatmul.mubr.bf16.vlgmr.msra.gmra.mrb[0].mxu0 %v738_v46 }
  0xef   : > { %v711_v33 = vadd.f32 %v1797_v57, %v688_v49  ;;  %v341_v51 = vpop.permute.xlu1 %340  ;;  %v632_v5 = vpop.permute.xlu0 %631 }
  0xf0   : > { %v712_v36 = vadd.f32 %v1797_v57, %v689_v35  ;;  %v739_v56 = vpack.c.bf16 %v726_v48, %v725_v50  ;;  %v390_v0 = vmul.f32 %v1721_v54, %v341_v51  ;;  %v674_v13 = vmul.f32 %v1758_v19, %v632_v5 }
  0xf1   : > { %v727_v47 = vmax.f32 %v711_v33, 0.0  ;;  %v395_v33 = vmul.f32 %v1721_v54, %v1708_v42 }
  0xf2   : > { %v728_v41 = vmax.f32 %v712_v36, 0.0  ;;  %1281 = vmatprep.mubr.bf16.mxu0 %v739_v56  ;;  %v579_v36 = vmul.f32 %v1746_v10, %v1767_v26 }
  0xf3   : > { %v644_v16 = vpop.permute.xlu0 %643 }
  0xf4   : > { %v432_v53 = vpop.permute.xlu1 %431  ;;  %v740_v59 = vpack.c.bf16 %v728_v41, %v727_v47  ;;  %v677_v3 = vmul.f32 %v1758_v19, %v644_v16 }
  0xf5   : > { %v474_v63 = vmul.f32 %v1725_v55, %v432_v53 }
  0xf6   : > { %1282 = vmatmul.mubr.bf16.gmra.mrb[4].mxu0 %v740_v59 }
  0xf7   : > { %v490_v6 = vadd.f32 %v474_v63, %v390_v0  ;;  %v648_v63 = vpop.permute.xlu0 %647 }
  0xf8   : > { %v436_v34 = vpop.permute.xlu1 %435 }
  0xf9   : > { %v475_v8 = vmul.f32 %v1725_v55, %v436_v34 }
  0xfb   : > { %v491_v20 = vadd.f32 %v475_v8, %v391_v11 }
  0xfd   : > { %v356_v58 = vpop.permute.xlu1 %355  ;;  %v591_v25 = vadd.f32 %v575_v18, %v491_v20 }
  0xfe   : > { %v393_v52 = vmul.f32 %v1721_v54, %v356_v58 }
 0x102   : > { %v444_v60 = vpop.permute.xlu1 %443 }
 0x103   : > { %v477_v9 = vmul.f32 %v1725_v55, %v444_v60 }
 0x105   : > { %v493_v21 = vadd.f32 %v477_v9, %v393_v52  ;;  %v660_v9 = vpop.permute.xlu0 %659 }
 0x107   : > { %v532_v62 = vpop.permute.xlu1 %531 }
 0x108   : > { %v574_v2 = vmul.f32 %v1746_v10, %v532_v62 }
 0x10a   : > { %v590_v7 = vadd.f32 %v574_v2, %v490_v6  ;;  %v678_v6 = vmul.f32 %v1758_v19, %v648_v63 }
 0x10b   : > { %v540_v4 = vpop.permute.xlu1 %539 }
 0x10c   : > { %v690_v22 = vadd.f32 %v674_v13, %v590_v7  ;;  %v576_v38 = vmul.f32 %v1746_v10, %v540_v4  ;;  %v1411_v13 = vld [vmem:[%s1957_s5 + $0x30] sm:$0xff]  }
 0x10d   : > { %1305 = vmatprep.subr.bf16.mxu1 %v1411_v13 }
 0x10e   : > { %v713_v27 = vadd.f32 %v1797_v57, %v690_v22  ;;  %v592_v28 = vadd.f32 %v576_v38, %v1731_v61  ;;  %1306 = vmatpush3.bf16.msra.mxu1 %v1411_v13 }
 0x10f   : > { %v544_v14 = vpop.permute.xlu1 %543 }
 0x110   : > { %v577_v15 = vmul.f32 %v1746_v10, %v544_v14  ;;  %v729_v40 = vmax.f32 %v713_v27, 0.0  ;;  %v681_v14 = vmul.f32 %v1758_v19, %v660_v9 }
 0x112   : > { %v593_v23 = vadd.f32 %v577_v15, %v493_v21  ;;  %v1412_v21 = vld [vmem:[%s1957_s5 + $0x38] sm:$0xff]  }
 0x113   : > { %1307 = vmatprep.subr.bf16.mxu1 %v1412_v21 }
 0x114   : > { %v636_v24 = vpop.permute.xlu1 %635  ;;  %v693_v30 = vadd.f32 %v677_v3, %v593_v23  ;;  %1308 = vmatpush3.bf16.msra.mxu1 %v1412_v21 }
 0x115   : > { %v675_v12 = vmul.f32 %v1758_v19, %v636_v24 }
 0x116   : > { %v716_v43 = vadd.f32 %v1797_v57, %v693_v30 }
 0x117   : > { %v691_v31 = vadd.f32 %v675_v12, %v591_v25 }
 0x118   : > { %v640_v32 = vpop.permute.xlu1 %639  ;;  %v732_v48 = vmax.f32 %v716_v43, 0.0 }
 0x119   : > { %v714_v17 = vadd.f32 %v1797_v57, %v691_v31  ;;  %v676_v29 = vmul.f32 %v1758_v19, %v640_v32 }
 0x11b   : > { %v730_v45 = vmax.f32 %v714_v17, 0.0  ;;  %v692_v39 = vadd.f32 %v676_v29, %v592_v28 }
 0x11d   : > { %v715_v37 = vadd.f32 %v1797_v57, %v692_v39  ;;  %v361_v44 = vpop.permute.xlu1 %360  ;;  %v741_v46 = vpack.c.bf16 %v730_v45, %v729_v40 }
 0x11e   : > { %v394_v58 = vmul.f32 %v1721_v54, %v361_v44 }
 0x11f   : > { %v731_v49 = vmax.f32 %v715_v37, 0.0  ;;  %1285 = vmatprep.mubr.bf16.mxu0 %v741_v46 }
 0x121   : > { %v742_v50 = vpack.c.bf16 %v732_v48, %v731_v49 }
 0x122   : > { %v448_v35 = vpop.permute.xlu1 %447 }
 0x123   : > { %1286 = vmatmul.mubr.bf16.gmra.mrb[8].mxu0 %v742_v50  ;;  %v478_v34 = vmul.f32 %v1725_v55, %v448_v35 }
 0x125   : > { %v494_v0 = vadd.f32 %v478_v34, %v394_v58 }
 0x126   : > { %v452_v61 = vpop.permute.xlu1 %451 }
 0x127   : > { %v479_v51 = vmul.f32 %v1725_v55, %v452_v61 }
 0x129   : > { %v495_v56 = vadd.f32 %v479_v51, %v395_v33 }
 0x12b   : > { %v376_v47 = vpop.permute.xlu1 %375  ;;  %v595_v41 = vadd.f32 %v579_v36, %v495_v56 }
 0x12c   : > { %v397_v2 = vmul.f32 %v1721_v54, %v376_v47 }
 0x130   : > { %v460_v53 = vpop.permute.xlu1 %459 }
 0x131   : > { %v481_v42 = vmul.f32 %v1725_v55, %v460_v53 }
 0x133   : > { %v497_v8 = vadd.f32 %v481_v42, %v397_v2 }
 0x135   : > { %v548_v59 = vpop.permute.xlu1 %547 }
 0x136   : > { %v578_v60 = vmul.f32 %v1746_v10, %v548_v59 }
 0x138   : > { %v594_v4 = vadd.f32 %v578_v60, %v494_v0 }
 0x139   : > { %v556_v62 = vpop.permute.xlu1 %555 }
 0x13a   : > { %v694_v11 = vadd.f32 %v678_v6, %v594_v4  ;;  %v580_v55 = vmul.f32 %v1746_v10, %v556_v62 }
 0x13c   : > { %v717_v18 = vadd.f32 %v1797_v57, %v694_v11  ;;  %v596_v22 = vadd.f32 %v580_v55, %v1734_v1  ;;  %v1205_v1 = vld [vmem:[%s1956_s4] ss:$0 sm:$0xff] }
 0x13d   : > { %v560_v26 = vpop.permute.xlu1 %559 }
 0x13e   : > { %v581_v5 = vmul.f32 %v1746_v10, %v560_v26  ;;  %v733_v38 = vmax.f32 %v717_v18, 0.0 }
 0x140   : > { %v597_v52 = vadd.f32 %v581_v5, %v497_v8 }
 0x142   : > { %v652_v7 = vpop.permute.xlu1 %651  ;;  %v697_v15 = vadd.f32 %v681_v14, %v597_v52 }
 0x143   : > { %v679_v54 = vmul.f32 %v1758_v19, %v652_v7 }
 0x144   : > { %v720_v25 = vadd.f32 %v1797_v57, %v697_v15 }
 0x145   : > { %v695_v16 = vadd.f32 %v679_v54, %v595_v41 }
 0x146   : > { %v656_v20 = vpop.permute.xlu1 %655  ;;  %v736_v31 = vmax.f32 %v720_v25, 0.0 }
 0x147   : > { %v718_v23 = vadd.f32 %v1797_v57, %v695_v16  ;;  %v680_v3 = vmul.f32 %v1758_v19, %v656_v20 }
 0x149   : > { %v734_v10 = vmax.f32 %v718_v23, 0.0  ;;  %v696_v24 = vadd.f32 %v680_v3, %v596_v22 }
 0x14b   : > { %v719_v12 = vadd.f32 %v1797_v57, %v696_v24  ;;  %v743_v27 = vpack.c.bf16 %v734_v10, %v733_v38  ;;  %v1214_v38 = vld [vmem:[%s1958_s6] ss:$0 sm:$0xff] }
 0x14d   : > { %v735_v30 = vmax.f32 %v719_v12, 0.0  ;;  %1289 = vmatprep.mubr.bf16.mxu0 %v743_v27 }
 0x14f   : > { %v744_v32 = vpack.c.bf16 %v736_v31, %v735_v30 }
 0x151   : > { %1290 = vmatmul.mubr.bf16.gmra.mrb[12].mxu0 %v744_v32 }
 0x1c1   : > { %v1279_v19 = vpop.f32.mrb[0].mxu0 }
 0x1c2   : > { %v859_v28 = vadd.f32 %v1279_v19, %v1205_v1  ;;  %v850_v17 = vpop.f32.mrb[1].mxu0 }
 0x1c3   : > { %v851_v29 = vadd.f32 %v1205_v1, %v850_v17  ;;  %v1280_v40 = vpop.f32.mrb[2].mxu0 }
 0x1c4   : > { %v862_v43 = vadd.f32 %v1280_v40, %v1205_v1  ;;  %v853_v45 = vpop.f32.mrb[3].mxu0  ;;  %v915_v37 = vmax.f32 %v859_v28, 0.0 }
 0x1c5   : > { %v854_v39 = vadd.f32 %v1205_v1, %v853_v45  ;;  %v913_v44 = vmax.f32 %v851_v29, 0.0 }
 0x1c6   : > { %v916_v57 = vmax.f32 %v862_v43, 0.0 }
 0x1c7   : > { %v914_v46 = vmax.f32 %v854_v39, 0.0 }
 0x1c8   : > { %v930_v48 = vpack.c.bf16 %v916_v57, %v915_v37 }
 0x1c9   : > { %v1283_v49 = vpop.f32.mrb[4].mxu0  ;;  %v929_v50 = vpack.c.bf16 %v914_v46, %v913_v44 }
 0x1ca   : > { %v875_v35 = vadd.f32 %v1283_v49, %v1205_v1  ;;  %v866_v61 = vpop.f32.mrb[5].mxu0 }
 0x1cb   : > { %v867_v33 = vadd.f32 %v1205_v1, %v866_v61  ;;  %v1284_v51 = vpop.f32.mrb[6].mxu0  ;;  %1309 = vmatprep.mubr.bf16.mxu1 %v929_v50 }
 0x1cc   : > { %v878_v36 = vadd.f32 %v1284_v51, %v1205_v1  ;;  %v869_v56 = vpop.f32.mrb[7].mxu0  ;;  %1310 = vmatmul.mubr.bf16.vlgmr.msra.gmra.mrb[0].mxu1 %v930_v48  ;;  %v919_v41 = vmax.f32 %v875_v35, 0.0 }
 0x1cd   : > { %v870_v47 = vadd.f32 %v1205_v1, %v869_v56  ;;  %v917_v59 = vmax.f32 %v867_v33, 0.0 }
 0x1ce   : > { %v920_v53 = vmax.f32 %v878_v36, 0.0 }
 0x1cf   : > { %v918_v34 = vmax.f32 %v870_v47, 0.0 }
 0x1d0   : > { %v932_v58 = vpack.c.bf16 %v920_v53, %v919_v41 }
 0x1d1   : > { %v931_v60 = vpack.c.bf16 %v918_v34, %v917_v59 }
 0x1d3   : > { %1313 = vmatprep.mubr.bf16.mxu1 %v931_v60 }
 0x1d4   : > { %1314 = vmatmul.mubr.bf16.gmra.mrb[4].mxu1 %v932_v58 }
 0x1f6   : > { %v1287_v62 = vpop.f32.mrb[8].mxu0 }
 0x1f7   : > { %v891_v63 = vadd.f32 %v1287_v62, %v1205_v1  ;;  %v882_v0 = vpop.f32.mrb[9].mxu0 }
 0x1f8   : > { %v883_v42 = vadd.f32 %v1205_v1, %v882_v0  ;;  %v1288_v2 = vpop.f32.mrb[10].mxu0 }
 0x1f9   : > { %v894_v4 = vadd.f32 %v1288_v2, %v1205_v1  ;;  %v885_v26 = vpop.f32.mrb[11].mxu0  ;;  %v923_v6 = vmax.f32 %v891_v63, 0.0 }
 0x1fa   : > { %v886_v5 = vadd.f32 %v1205_v1, %v885_v26  ;;  %v921_v9 = vmax.f32 %v883_v42, 0.0 }
 0x1fb   : > { %v924_v8 = vmax.f32 %v894_v4, 0.0 }
 0x1fc   : > { %v922_v11 = vmax.f32 %v886_v5, 0.0 }
 0x1fd   : > { %v934_v52 = vpack.c.bf16 %v924_v8, %v923_v6 }
 0x1fe   : > { %v933_v7 = vpack.c.bf16 %v922_v11, %v921_v9 }
 0x200   : > { %1317 = vmatprep.mubr.bf16.mxu1 %v933_v7 }
 0x201   : > { %1318 = vmatmul.mubr.bf16.gmra.mrb[8].mxu1 %v934_v52 }
 0x224   : > { %v1291_v13 = vpop.f32.mrb[12].mxu0 }
 0x225   : > { %v907_v14 = vadd.f32 %v1291_v13, %v1205_v1  ;;  %v898_v55 = vpop.f32.mrb[13].mxu0 }
 0x226   : > { %v899_v54 = vadd.f32 %v1205_v1, %v898_v55  ;;  %v1292_v15 = vpop.f32.mrb[14].mxu0 }
 0x227   : > { %v910_v16 = vadd.f32 %v1292_v15, %v1205_v1  ;;  %v901_v18 = vpop.f32.mrb[15].mxu0  ;;  %v927_v21 = vmax.f32 %v907_v14, 0.0 }
 0x228   : > { %v902_v20 = vadd.f32 %v1205_v1, %v901_v18  ;;  %v925_v23 = vmax.f32 %v899_v54, 0.0 }
 0x229   : > { %v928_v22 = vmax.f32 %v910_v16, 0.0 }
 0x22a   : > { %v926_v3 = vmax.f32 %v902_v20, 0.0 }
 0x22b   : > { %v936_v10 = vpack.c.bf16 %v928_v22, %v927_v21 }
 0x22c   : > { %v935_v24 = vpack.c.bf16 %v926_v3, %v925_v23 }
 0x22e   : > { %1321 = vmatprep.mubr.bf16.mxu1 %v935_v24 }
 0x22f   : > { %1322 = vmatmul.mubr.bf16.gmra.mrb[12].mxu1 %v936_v10 }
 0x29f   : > { %v1311_v25 = vpop.f32.mrb[0].mxu1 }
 0x2a0   : > { %v1051_v12 = vadd.f32 %v1311_v25, %v1214_v38  ;;  %v1042_v27 = vpop.f32.mrb[1].mxu1 }
 0x2a1   : > { %v1043_v30 = vadd.f32 %v1214_v38, %v1042_v27  ;;  %v1312_v31 = vpop.f32.mrb[2].mxu1 }
 0x2a2   : > { %1107 = vst [vmem:[%s1882_s19 + $0x10] sm:$0xff] %v1051_v12  ;;  %v1054_v32 = vadd.f32 %v1312_v31, %v1214_v38  ;;  %v1045_v1 = vpop.f32.mrb[3].mxu1 }
 0x2a3   : > { %1105 = vst [vmem:[%s1882_s19] sm:$0xff] %v1043_v30  ;;  %v1046_v19 = vadd.f32 %v1214_v38, %v1045_v1 }
 0x2a4   : > { %1108 = vst [vmem:[%s1882_s19 + $0x18] sm:$0xff] %v1054_v32 }
 0x2a5   : > { %1106 = vst [vmem:[%s1882_s19 + $0x8] sm:$0xff] %v1046_v19 }
 0x2a7   : > { %v1315_v28 = vpop.f32.mrb[4].mxu1 }
 0x2a8   : > { %v1067_v17 = vadd.f32 %v1315_v28, %v1214_v38  ;;  %v1058_v29 = vpop.f32.mrb[5].mxu1 }
 0x2a9   : > { %v1059_v40 = vadd.f32 %v1214_v38, %v1058_v29  ;;  %v1316_v43 = vpop.f32.mrb[6].mxu1 }
 0x2aa   : > { %1111 = vst [vmem:[%s1882_s19 + $0x30] sm:$0xff] %v1067_v17  ;;  %v1070_v45 = vadd.f32 %v1316_v43, %v1214_v38  ;;  %v1061_v39 = vpop.f32.mrb[7].mxu1 }
 0x2ab   : > { %1109 = vst [vmem:[%s1882_s19 + $0x20] sm:$0xff] %v1059_v40  ;;  %v1062_v37 = vadd.f32 %v1214_v38, %v1061_v39 }
 0x2ac   : > { %1112 = vst [vmem:[%s1882_s19 + $0x38] sm:$0xff] %v1070_v45 }
 0x2ad   : > { %1110 = vst [vmem:[%s1882_s19 + $0x28] sm:$0xff] %v1062_v37 }
 0x2d4   : > { %v1319_v57 = vpop.f32.mrb[8].mxu1 }
 0x2d5   : > { %v1083_v44 = vadd.f32 %v1319_v57, %v1214_v38  ;;  %v1074_v46 = vpop.f32.mrb[9].mxu1 }
 0x2d6   : > { %v1075_v48 = vadd.f32 %v1214_v38, %v1074_v46  ;;  %v1320_v49 = vpop.f32.mrb[10].mxu1 }
 0x2d7   : > { %1115 = vst [vmem:[%s1882_s19 + $0x50] sm:$0xff] %v1083_v44  ;;  %v1086_v50 = vadd.f32 %v1320_v49, %v1214_v38  ;;  %v1077_v35 = vpop.f32.mrb[11].mxu1 }
 0x2d8   : > { %1113 = vst [vmem:[%s1882_s19 + $0x40] sm:$0xff] %v1075_v48  ;;  %v1078_v61 = vadd.f32 %v1214_v38, %v1077_v35 }
 0x2d9   : > { %1116 = vst [vmem:[%s1882_s19 + $0x58] sm:$0xff] %v1086_v50 }
 0x2da   : > { %1114 = vst [vmem:[%s1882_s19 + $0x48] sm:$0xff] %v1078_v61 }
 0x302   : > { %v1323_v33 = vpop.f32.mrb[12].mxu1 }
 0x303   : > { %v1099_v51 = vadd.f32 %v1323_v33, %v1214_v38  ;;  %v1090_v36 = vpop.f32.mrb[13].mxu1 }
 0x304   : > { %v1091_v56 = vadd.f32 %v1214_v38, %v1090_v36  ;;  %v1324_v47 = vpop.f32.mrb[14].mxu1 }
 0x305   : > { %1119 = vst [vmem:[%s1882_s19 + $0x70] sm:$0xff] %v1099_v51  ;;  %v1102_v41 = vadd.f32 %v1324_v47, %v1214_v38  ;;  %v1093_v53 = vpop.f32.mrb[15].mxu1 }
 0x306   : > { %1117 = vst [vmem:[%s1882_s19 + $0x60] sm:$0xff] %v1091_v56  ;;  %v1094_v59 = vadd.f32 %v1214_v38, %v1093_v53 }
 0x307   : > { %1120 = vst [vmem:[%s1882_s19 + $0x78] sm:$0xff] %v1102_v41 }
 0x308   : > { %1118 = vst [vmem:[%s1882_s19 + $0x68] sm:$0xff] %v1094_v59 }
 0x309   : > { %1426 = shalt.err (!%p1423_p3)
}
 0x30a   : > { %s1427_s14 = scalar_lea.hbm %s1902_s23, 2048  ;;  %s1431_s18 = scalar_lea.hbm %s1959_s7, 4096 }
 0x30b   : > { %p1428_p4 = scmp.ne.s32.totalorder %s1902_s23, %s1427_s14  ;;  %p1432_p9 = scmp.lt.u32.totalorder %s1902_s23, %s1959_s7 }
 0x30c   : > { %p1433_p10 = scmp.lt.u32.totalorder %s1431_s18, %s1427_s14  ;;  %p1435_p12 = scmp.lt.u32.totalorder %s1427_s14, %s1902_s23 }
 0x30d   : > { %p1429_p7 = pnand %p1428_p4, %p1562_p5 }
 0x30e   : > { %p1434_p11 = por %p1433_p10, %p1432_p9 }
 0x30f   : > { %p1430_p8 = pneg %p1429_p7 }
 0x310   : > { %p1436_p13 = por %p1435_p12, %p1434_p11 }
 0x312   : > { %p1437_p0 = pnand %p1436_p13, %p1430_p8 }
 0x314   : > { %1440 = shalt.err (!%p1437_p0)
}
 0x315   : > { %s1482_s21 = smov 128   ;;  %s1483_s22 = smov 8  }
 0x316   : > { %1325 = dma.vmem_to_hbm [thread:$0]  (%p1562_p5), %s1904_s17, 2048, %s1902_s23, %s1911_s28, %s1482_s21, %s1482_s21, %s1483_s22  }
 0x317 PF: > { %p1331_p1 = scmp.ge.s32.totalorder %s1475_s27, 2  ;;  %s1150_s29 = sand.u32 1, %s1463_s24  }
 0x318   : > { %s1151_s8 = scalar_lea.sflag [#allocation3], %s1150_s29 }
 0x319   : > { %p1328_p2 = pnand %p1331_p1, %p1566_p6 }
 0x31b   : > { %1458 = dma.done.wait (!%p1328_p2), %s1151_s8, 2048  }
 0x31c   : > { %1460 = vsyncadd (!%p1328_p2), %s1151_s8, 4294965248  ;;  %p17_p3 = scmp.ge.s32.totalorder %s1549_s30, 4   ;;  %s1962_s24 = smov %s1467_s25 }
 0x31d   : > { %s1963_s25 = smov %s1471_s26  ;;  %s1964_s26 = smov %s1560_s10 }
 0x31e   : > { %s1965_s27 = smov %s1549_s30  ;;  %19 = sbr.rel (!%p17_p3) target bundleno = 3 (0x3), region = 83 }
 0x325   :  { %1156 = vsyncpa [#allocation3], 1 }
 0x326   :  { %1158 = vsyncpa [#allocation3 + $0x1], 1 }

</bundles_post_ra>
